<compile_context>
chip_gen: v7x
topology: tpu7x:2x2x1
jax: 0.10.0
libtpu: 0.0.40
codegen_flags: <defaults>
</compile_context>

<pallas_src>
import jax
import jax.numpy as jnp
from jax.experimental import pallas as pl
from jax.experimental.pallas import tpu as pltpu


# ----------------------------------------------------------------------------
# Kernel 1: one-shot SE gate computation (tiny: B x Cout output).
# ----------------------------------------------------------------------------
def se_gate_kernel(fs_ref, w1_ref, w2_ref, gate_ref):
    # fs_ref: (ph*pw, B, Cin*16) — one adaptive-pool window position per
    # leading index, so the pooling mean is a cheap leading-axis reduction.
    pooled = jnp.mean(fs_ref[...].astype(jnp.float32), axis=0)          # (B, Cin*16)

    # 4x4 "valid" conv on the pooled 4x4 map == dense matmul (weight
    # pre-transposed in the wrapper: (Cin*16, Cout)).
    h = jnp.dot(pooled, w1_ref[...].astype(jnp.float32),
                preferred_element_type=jnp.float32)                     # (B, Cout)
    h = h * jax.nn.sigmoid(h)                                           # Swish

    # 1x1 conv == matmul (weight pre-transposed: (Cout, Cout)).
    g = jnp.dot(h, w2_ref[...].astype(jnp.float32),
                preferred_element_type=jnp.float32)                     # (B, Cout)
    gate_ref[...] = jax.nn.sigmoid(g).astype(gate_ref.dtype)            # SE gate


# ----------------------------------------------------------------------------
# Kernel 2: hot path — streaming broadcast multiply, tiled over (B, spatial).
# ----------------------------------------------------------------------------
def se_scale_kernel(gate_ref, fb_ref, out_ref):
    # gate_ref: (Cout, 1) — this batch element's gate (native dtype).
    # fb_ref / out_ref: (Cout, TILE_S) — lane-dense spatial tile, native dtype.
    out_ref[...] = fb_ref[...] * gate_ref[...]


def _pick_spatial_tile(s, cout, itemsize, max_block_bytes=2 << 20):
    """Lane-dense spatial tile: multiple of 128, block kept small enough that
    double-buffered in+out tiles stay well under the scoped VMEM limit on all
    TPU generations (incl. v7x's 64 MiB physical VMEM)."""
    max_tile = max(128, min(2048, max_block_bytes // max(1, cout * itemsize)))
    max_tile = (max_tile // 128) * 128
    if s <= max_tile:
        return s
    t = max_tile
    while t >= 128:
        if s % t == 0:
            return t
        t -= 128
    return s  # non-divisible fallback (fastgan shapes are powers of two)


def _spectral_normalize(w):
    # TODO(synk): PyTorch spectral_norm uses a 1-step power-iteration estimate of
    # sigma; here we use the exact largest singular value (same limit behavior).
    mat = w.reshape(w.shape[0], -1)
    sigma = jnp.linalg.norm(mat, ord=2)
    return w / sigma


def se_block(feat_small, feat_big, w1, w2):
    """feat_small: (B, Cin, Hs, Ws) NCHW; feat_big: (B, Cout, H, W) NCHW.
    w1: (Cout, Cin, 4, 4); w2: (Cout, Cout, 1, 1) — already spectral-normalized."""
    B, Cin, Hs, Ws = feat_small.shape
    Bb, Cout, H, W = feat_big.shape
    assert B == Bb and Hs % 4 == 0 and Ws % 4 == 0
    ph, pw = Hs // 4, Ws // 4
    S = H * W

    # ---- layout glue (pure plumbing, no compute) ---------------------------
    # (B, Cin, Hs, Ws) -> (ph*pw, B, Cin*16): one pooling-window position per
    # leading index; flat column index is c*16 + i*4 + j (matches w1 flatten).
    fs = feat_small.reshape(B, Cin, 4, ph, 4, pw).transpose(3, 5, 0, 1, 2, 4)
    fs = fs.reshape(ph * pw, B, Cin * 16)
    # Pre-transposed weights: no `.T` inside the kernel.
    w1t = w1.reshape(Cout, Cin * 16).T                     # (Cin*16, Cout)
    w2t = w2.reshape(Cout, Cout).T                         # (Cout, Cout)

    # ---- gate: computed once in a tiny single-block kernel -----------------
    vmem = pl.BlockSpec(memory_space=pltpu.MemorySpace.VMEM)
    gate = pl.pallas_call(
        se_gate_kernel,
        out_shape=jax.ShapeDtypeStruct((B, Cout), feat_big.dtype),
        in_specs=[vmem, vmem, vmem],
        out_specs=vmem,
    )(fs, w1t, w2t)

    # ---- hot path: tiled, double-buffered broadcast multiply ---------------
    fb = feat_big.reshape(B, Cout, S)                      # lane-dense spatial axis
    gate3 = gate.reshape(B, Cout, 1)
    tile_s = _pick_spatial_tile(S, Cout, jnp.dtype(feat_big.dtype).itemsize)
    grid = (B, S // tile_s)

    # NOTE: if the caller does not reuse feat_big, input_output_aliases={1: 0}
    # would let the output reuse feat_big's HBM buffer; omitted here because
    # the test reuses feat_big for the reference check.
    out = pl.pallas_call(
        se_scale_kernel,
        out_shape=jax.ShapeDtypeStruct((B, Cout, S), feat_big.dtype),
        grid=grid,
        in_specs=[
            pl.BlockSpec((None, Cout, 1), lambda b, s: (b, 0, 0)),       # gate (tiny)
            pl.BlockSpec((None, Cout, tile_s), lambda b, s: (b, 0, s)),  # feat_big tile
        ],
        out_specs=pl.BlockSpec((None, Cout, tile_s), lambda b, s: (b, 0, s)),
        compiler_params=pltpu.CompilerParams(
            dimension_semantics=("parallel", "parallel")),
    )(gate3, fb)
    return out.reshape(B, Cout, H, W)


def se_block_reference(feat_small, feat_big, w1, w2):
    """Pure-JAX reference (mirrors the PyTorch module)."""
    B, Cin, Hs, Ws = feat_small.shape
    Cout = w1.shape[0]
    ph, pw = Hs // 4, Ws // 4
    pooled = feat_small.reshape(B, Cin, 4, ph, 4, pw).mean(axis=(3, 5))    # (B,Cin,4,4)
    h = jnp.einsum('bcij,ocij->bo', pooled, w1)                            # conv4x4
    h = h * jax.nn.sigmoid(h)                                              # Swish
    g = jnp.einsum('bo,po->bp', h, w2[:, :, 0, 0])                         # conv1x1
    g = jax.nn.sigmoid(g)
    return feat_big * g[:, :, None, None]


if __name__ == "__main__":
    key = jax.random.PRNGKey(0)
    k1, k2, k3, k4 = jax.random.split(key, 4)

    B, Cin, Cout = 2, 4, 8
    Hs = Ws = 16      # feat_small spatial
    H = W = 32        # feat_big spatial

    feat_small = jax.random.normal(k1, (B, Cin, Hs, Ws), dtype=jnp.float32)
    feat_big = jax.random.normal(k2, (B, Cout, H, W), dtype=jnp.float32)

    # Deterministic parameter init (kaiming-uniform-ish scale), then spectral norm.
    fan1 = Cin * 4 * 4
    w1 = jax.random.uniform(k3, (Cout, Cin, 4, 4), jnp.float32,
                            minval=-1.0, maxval=1.0) * (1.0 / fan1) ** 0.5
    fan2 = Cout
    w2 = jax.random.uniform(k4, (Cout, Cout, 1, 1), jnp.float32,
                            minval=-1.0, maxval=1.0) * (1.0 / fan2) ** 0.5
    w1 = _spectral_normalize(w1)
    w2 = _spectral_normalize(w2)

    out = se_block(feat_small, feat_big, w1, w2)
    out = jax.block_until_ready(out)

    ref = se_block_reference(feat_small, feat_big, w1, w2)
    assert out.shape == (B, Cout, H, W)
    assert jnp.allclose(out, ref, atol=1e-5, rtol=1e-5)

    print("KERNEL_OK")
</pallas_src>

<mosaic_0001>
module attributes {stable_mosaic.version = 11 : i64} {
  func.func @se_gate_kernel(%arg0: memref<16x2x64xf32, #tpu.memory_space<vmem>>, %arg1: memref<64x8xf32, #tpu.memory_space<vmem>>, %arg2: memref<8x8xf32, #tpu.memory_space<vmem>>, %arg3: memref<2x8xf32, #tpu.memory_space<vmem>>) attributes {dimension_semantics = [], scalar_prefetch = 0 : i64, scratch_operands = 0 : i64, tpu.core_type = #tpu.core_type<tc>} {
    %c0 = arith.constant 0 : index
    %c0_0 = arith.constant 0 : index
    %c0_1 = arith.constant 0 : index
    %0 = vector.load %arg0[%c0, %c0_0, %c0_1] : memref<16x2x64xf32, #tpu.memory_space<vmem>>, vector<16x2x64xf32>
    %cst = arith.constant dense<0.000000e+00> : vector<2x64xf32>
    %1 = vector.multi_reduction <add>, %0, %cst [0] : vector<16x2x64xf32> to vector<2x64xf32>
    %cst_2 = arith.constant 1.600000e+01 : f32
    %2 = vector.broadcast %cst_2 : f32 to vector<2x64xf32>
    %3 = arith.divf %1, %2 : vector<2x64xf32>
    %c0_3 = arith.constant 0 : index
    %c0_4 = arith.constant 0 : index
    %4 = vector.load %arg1[%c0_3, %c0_4] : memref<64x8xf32, #tpu.memory_space<vmem>>, vector<64x8xf32>
    %cst_5 = arith.constant dense<0.000000e+00> : vector<2x8xf32>
    %5 = tpu.matmul %3, %4, %cst_5 {dimension_numbers = #tpu.dot_dimension_numbers<[1], [0], [0], [1], [0, 0, 1, 1], [], []>} : vector<2x64xf32>, vector<64x8xf32>, vector<2x8xf32> -> vector<2x8xf32>
    %6 = arith.negf %5 : vector<2x8xf32>
    %7 = math.exp %6 : vector<2x8xf32>
    %cst_6 = arith.constant 1.000000e+00 : f32
    %8 = vector.broadcast %cst_6 : f32 to vector<2x8xf32>
    %9 = arith.addf %8, %7 : vector<2x8xf32>
    %10 = arith.divf %8, %9 : vector<2x8xf32>
    %11 = arith.mulf %5, %10 : vector<2x8xf32>
    %c0_7 = arith.constant 0 : index
    %c0_8 = arith.constant 0 : index
    %12 = vector.load %arg2[%c0_7, %c0_8] : memref<8x8xf32, #tpu.memory_space<vmem>>, vector<8x8xf32>
    %cst_9 = arith.constant dense<0.000000e+00> : vector<2x8xf32>
    %13 = tpu.matmul %11, %12, %cst_9 {dimension_numbers = #tpu.dot_dimension_numbers<[1], [0], [0], [1], [0, 0, 1, 1], [], []>} : vector<2x8xf32>, vector<8x8xf32>, vector<2x8xf32> -> vector<2x8xf32>
    %14 = arith.negf %13 : vector<2x8xf32>
    %15 = math.exp %14 : vector<2x8xf32>
    %cst_10 = arith.constant 1.000000e+00 : f32
    %16 = vector.broadcast %cst_10 : f32 to vector<2x8xf32>
    %17 = arith.addf %16, %15 : vector<2x8xf32>
    %18 = arith.divf %16, %17 : vector<2x8xf32>
    %c0_11 = arith.constant 0 : index
    %c0_12 = arith.constant 0 : index
    %19 = vector.load %arg3[%c0_11, %c0_12] : memref<2x8xf32, #tpu.memory_space<vmem>>, vector<2x8xf32>
    tpu.vector_store %arg3[%c0_11, %c0_12], %18 {strides = array<i32>} : memref<2x8xf32, #tpu.memory_space<vmem>>, vector<2x8xf32>,
    return
  }
}

</mosaic_0001>

<bundles_post_ra>
// kernel: tpu_custom_call.1
= control target key start
LH: loop header
LB: loop body
LE: loop exit
PB: predicated region body
PF: predicated region fallthrough
CT: control target
= control target key end

     0   :  { %v338_v3 = vmov 0.0|0.0   ;;  %vm339_vm0 = vmmov 0   ;;  %v340_v6 = vmov 0.0   ;;  %vm31_vm1 = vcmask 517120   ;;  %s465_s0 = inlined_call_operand.vmem [shape: f32[16,2,64], index: 0, kind: input, shape index: {}]   ;;  %s466_s1 = inlined_call_operand.vmem [shape: f32[64,8], index: 1, kind: input, shape index: {}]   ;;  %s467_s2 = inlined_call_operand.vmem [shape: f32[8,8], index: 2, kind: input, shape index: {}]   ;;  %s468_s3 = inlined_call_operand.hbm [shape: f32[2,8], index: 3, kind: output, shape index: {}]  }
   0x1   :  { %v65_v0 = vld [vmem:[%s466_s1] sm:$0xff]  ;;  %v66_v1 = vld [vmem:[%s466_s1 + $0x8] sm:$0xff]  ;;  %v67_v2 = vld [vmem:[%s466_s1 + $0x10] sm:$0xff]  ;;  %290 = vmatprep.subr.bf16.mxu0 %v338_v3  ;;  %282 = vmatprep.mubr.msk.f32.mxu0 %vm339_vm0, %v340_v6 }
   0x2   :  { %v291_v4 = vpack.c.bf16 %v66_v1, %v65_v0  ;;  %v68_v5 = vld [vmem:[%s466_s1 + $0x18] sm:$0xff]  ;;  %285 = vmatprep.subr.mxu1 %v340_v6  ;;  %287 = vmatprep.mubr.msk.f32.mxu1 %vm339_vm0, %v340_v6  ;;  %v69_v8 = vld [vmem:[%s466_s1 + $0x20] sm:$0xff]  ;;  %v70_v9 = vld [vmem:[%s466_s1 + $0x28] sm:$0xff] }
   0x3   :  { %v294_v7 = vpack.c.bf16 %v68_v5, %v67_v2  ;;  %v15_v10 = vld [vmem:[%s465_s0] sm:$0x3]  ;;  %v16_v11 = vld [vmem:[%s465_s0 + $0x2] sm:$0x3]  ;;  %v17_v12 = vld [vmem:[%s465_s0 + $0x4] sm:$0x3]  ;;  %v297_v13 = vpack.c.bf16 %v70_v9, %v69_v8 }
   0x4   :  { %292 = vmatpush3.bf16.msra.mxu0 %v291_v4  ;;  %v71_v14 = vld [vmem:[%s466_s1 + $0x30] sm:$0xff]  ;;  %v18_v15 = vld [vmem:[%s465_s0 + $0x6] sm:$0x3]  ;;  %v72_v16 = vld [vmem:[%s466_s1 + $0x38] sm:$0xff]  ;;  %v32_v17 = vsel %vm31_vm1, %v15_v10, 0.0  ;;  %v33_v18 = vsel %vm31_vm1, %v16_v11, 0.0 }
   0x5   :  { %293 = vmatprep.subr.bf16.mxu0 %v338_v3  ;;  %v35_v19 = vsel %vm31_vm1, %v17_v12, 0.0 }
   0x8   :  { %295 = vmatpush3.bf16.msra.mxu0 %v294_v7 }
   0x9   :  { %296 = vmatprep.subr.bf16.mxu0 %v338_v3 }
   0xa   :  { %8 = vsyncpa [#allocation3], 0  ;;  %v19_v20 = vld [vmem:[%s465_s0 + $0x8] sm:$0x3]  ;;  %v34_v21 = vadd.f32 %v33_v18, %v32_v17  ;;  %v37_v22 = vsel %vm31_vm1, %v18_v15, 0.0  ;;  %v300_v23 = vpack.c.bf16 %v72_v16, %v71_v14  ;;  %vm73_vm2 = vcmask 523264  }
   0xb   :  { %v20_v24 = vld [vmem:[%s465_s0 + $0xa] sm:$0x3]  ;;  %v39_v26 = vsel %vm31_vm1, %v19_v20, 0.0  ;;  %v21_v27 = vld [vmem:[%s465_s0 + $0xc] sm:$0x3]  ;;  %v154_v62 = vld [vmem:[%s467_s2] sm:$0xff] }
   0xc   :  { %298 = vmatpush3.bf16.msra.mxu0 %v297_v13  ;;  %v36_v25 = vadd.f32 %v35_v19, %v34_v21  ;;  %v41_v29 = vsel %vm31_vm1, %v20_v24, 0.0  ;;  %v22_v30 = vld [vmem:[%s465_s0 + $0xe] sm:$0x3]  ;;  %v43_v32 = vsel %vm31_vm1, %v21_v27, 0.0  ;;  %v23_v33 = vld [vmem:[%s465_s0 + $0x10] sm:$0x3]  ;;  %286 = vmatpush3.msra.mxu1 %v154_v62 }
   0xd   :  { %299 = vmatprep.subr.bf16.mxu0 %v338_v3  ;;  %v45_v35 = vsel %vm31_vm1, %v22_v30, 0.0  ;;  %v24_v36 = vld [vmem:[%s465_s0 + $0x12] sm:$0x3]  ;;  %v47_v38 = vsel %vm31_vm1, %v23_v33, 0.0  ;;  %v25_v39 = vld [vmem:[%s465_s0 + $0x14] sm:$0x3] }
   0xe   :  { %v38_v28 = vadd.f32 %v37_v22, %v36_v25  ;;  %v49_v41 = vsel %vm31_vm1, %v24_v36, 0.0  ;;  %v26_v42 = vld [vmem:[%s465_s0 + $0x16] sm:$0x3]  ;;  %v51_v44 = vsel %vm31_vm1, %v25_v39, 0.0  ;;  %v27_v45 = vld [vmem:[%s465_s0 + $0x18] sm:$0x3] }
   0xf   :  { %v53_v47 = vsel %vm31_vm1, %v26_v42, 0.0  ;;  %v28_v48 = vld [vmem:[%s465_s0 + $0x1a] sm:$0x3]  ;;  %v55_v50 = vsel %vm31_vm1, %v27_v45, 0.0  ;;  %v29_v51 = vld [vmem:[%s465_s0 + $0x1c] sm:$0x3] }
  0x10   :  { %301 = vmatpush3.bf16.msra.mxu0 %v300_v23  ;;  %v40_v31 = vadd.f32 %v39_v26, %v38_v28  ;;  %v57_v53 = vsel %vm31_vm1, %v28_v48, 0.0  ;;  %v30_v54 = vld [vmem:[%s465_s0 + $0x1e] sm:$0x3]  ;;  %v59_v56 = vsel %vm31_vm1, %v29_v51, 0.0  ;;  %vm155_vm3 = vcmask 64512   ;;  %s341_s0 = smov [#allocation2]  }
  0x11   :  { %v61_v58 = vsel %vm31_vm1, %v30_v54, 0.0  ;;  %s243_s2 = sshll.u32 %s341_s0, 4  ;;  %vm235_vm4 = vcmask 58368   ;;  %s244_s2 = int_to_ptr.vmem [resolvable:$true] %s243_s2 }
  0x12   :  { %v42_v34 = vadd.f32 %v41_v29, %v40_v31  ;;  %s314_s7 = scalar_lea.vmem %s244_s2, 32  ;;  %p319_p1 = scmp.lt.s32.totalorder %s244_s2, %s244_s2 }
  0x13   :  { %p315_p0 = scmp.ne.s32.totalorder %s244_s2, %s314_s7  ;;  %p320_p2 = scmp.lt.s32.totalorder %s314_s7, %s314_s7 }
  0x14   :  { %v44_v37 = vadd.f32 %v43_v32, %v42_v34 }
  0x15   :  { %p321_p3 = por %p320_p2, %p319_p1 }
  0x16   :  { %v46_v40 = vadd.f32 %v45_v35, %v44_v37 }
  0x17   :  { %p322_p4 = pnand %p321_p3, %p315_p0 }
  0x18   :  { %v48_v43 = vadd.f32 %v47_v38, %v46_v40 }
  0x1a   :  { %v50_v46 = vadd.f32 %v49_v41, %v48_v43 }
  0x1c   :  { %v52_v49 = vadd.f32 %v51_v44, %v50_v46 }
  0x1e   :  { %v54_v52 = vadd.f32 %v53_v47, %v52_v49 }
  0x20   :  { %v56_v55 = vadd.f32 %v55_v50, %v54_v52 }
  0x22   :  { %v58_v57 = vadd.f32 %v57_v53, %v56_v55 }
  0x24   :  { %v60_v59 = vadd.f32 %v59_v56, %v58_v57 }
  0x26   :  { %v62_v60 = vadd.f32 %v61_v58, %v60_v59 }
  0x28   :  { %v64_v61 = vmul.f32 0.0625, %v62_v60 }
  0x2a   :  { %283 = vmatmul.mubr.msk.f32.vlgmr.msra.gmra.mrb[0].mxu0 %vm73_vm2, %v64_v61 }
  0xfd   :  { %v143_v63 = vpop.f32.mrb[0].mxu0 }
  0xfe   :  { %v252_v0 = vmul.f32 -1.442695, %v143_v63  ;;  %v284_v1 = vpop.f32.mrb[1].mxu0 }
 0x100   :  { %306 = vpow2.f32 %v252_v0 }
 0x10a   :  { %v307_v2 = vpop.eup %306 }
 0x10b   :  { %v150_v3 = vadd.f32 1.0, %v307_v2 }
 0x10d   :  { %308 = vrcp.f32 %v150_v3 }
 0x117   :  { %v309_v4 = vpop.eup %308 }
 0x118   :  { %v153_v5 = vmul.f32 %v309_v4, %v143_v63 }
 0x11a   :  { %288 = vmatmul.mubr.msk.f32.vlgmr.msra.gmra.mrb[0].mxu1 %vm155_vm3, %v153_v5 }
 0x1ed   :  { %v225_v6 = vpop.f32.mrb[0].mxu1 }
 0x1ee   :  { %v254_v7 = vmul.f32 -1.442695, %v225_v6  ;;  %v289_v8 = vpop.f32.mrb[1].mxu1 }
 0x1f0   :  { %310 = vpow2.f32 %v254_v7 }
 0x1fa   :  { %v311_v9 = vpop.eup %310 }
 0x1fb   :  { %v232_v10 = vadd.f32 1.0, %v311_v9 }
 0x1fd   :  { %312 = vrcp.f32 %v232_v10 }
 0x207   :  { %v313_v11 = vpop.eup %312 }
 0x208   :  { %236 = vst.msk [vmem:[#allocation2] sm:$0x3] %vm235_vm4, %v313_v11 }
 0x209   :  { %325 = shalt.err (!%p322_p4)
}
 0x20a   :  { %s326_s10 = scalar_lea.hbm %s468_s3, 32 }
 0x20b   :  { %p327_p5 = scmp.ne.s32.totalorder %s468_s3, %s326_s10  ;;  %p330_p6 = scmp.lt.u32.totalorder %s326_s10, %s468_s3 }
 0x20d   :  { %p332_p7 = pnand %p330_p6, %p327_p5 }
 0x20f   :  { %335 = shalt.err (!%p332_p7)
}
 0x210   :  { %246 = dma.vmem_to_hbm [thread:$0]  %s244_s2, 32, %s468_s3, [#allocation3]  }
 0x211   :  { %336 = dma.done.wait [#allocation3], 32  }
 0x212   :  { %337 = vsyncadd [#allocation3], 4294967264 }
 0x213   :  { %250 = vsyncpa [#allocation3], 1 }

</bundles_post_ra>
